<compile_context>
chip_gen: v7x
topology: tpu7x:2x2x1
jax: 0.10.0
libtpu: 0.0.40
codegen_flags: <defaults>
</compile_context>

<pallas_src>
import functools
import math

import jax
import jax.numpy as jnp
from jax.experimental import pallas as pl
from jax.experimental.pallas import tpu as pltpu


def _sdpa_kernel(*refs, scale, have_mask, have_attn):
    """One grid step = Bt heads x tq query rows of scaled dot-product attention."""
    q_ref, k_ref, v_ref = refs[0], refs[1], refs[2]
    nxt = 3
    m_ref = None
    if have_mask:
        m_ref = refs[nxt]
        nxt += 1
    ctx_ref = refs[nxt]
    attn_ref = refs[nxt + 1] if have_attn else None

    # Fold 1/sqrt(d_k) into q (fewer multiplies than scaling the score tile)
    # and feed the MXU native-dtype operands; accumulate in f32.
    q = q_ref[...] * jnp.asarray(scale, dtype=q_ref.dtype)
    scores = jnp.einsum("bqd,bdk->bqk", q, k_ref[...],
                        preferred_element_type=jnp.float32)

    if m_ref is not None:                       # masked_fill_(mask, -1e9)
        scores = jnp.where(m_ref[...] != 0, jnp.float32(-1.0e9), scores)

    # numerically stable softmax over the key axis, kept in f32
    scores = scores - jnp.max(scores, axis=-1, keepdims=True)
    e = jnp.exp(scores)
    attn = e / jnp.sum(e, axis=-1, keepdims=True)

    # context = attn @ v : probabilities in v's dtype, f32 MXU accumulation
    ctx = jnp.einsum("bqk,bkd->bqd", attn.astype(v_ref.dtype), v_ref[...],
                     preferred_element_type=jnp.float32)

    ctx_ref[...] = ctx.astype(ctx_ref.dtype)
    if attn_ref is not None:
        attn_ref[...] = attn.astype(attn_ref.dtype)


def _choose_tiles(B, S_q, S_k, d_k, d_v, itemsize, have_mask, have_attn):
    """Pick (heads-per-step, query-tile) so double-buffered blocks stay small."""
    # Query tile: full S_q for short sequences; otherwise a 32-multiple divisor
    # (32 keeps sublane tiling legal for every dtype, including the int8 mask).
    tq = S_q
    if S_q > 1024:
        for cand in range(1024, 31, -32):
            if S_q % cand == 0:
                tq = cand
                break

    per_head = itemsize * (tq * d_k + d_k * S_k + S_k * d_v + tq * d_v)
    if have_mask:
        per_head += tq * S_k                    # int8 mask tile
    if have_attn:
        per_head += itemsize * tq * S_k         # attn writeback tile
    per_head *= 2                               # double buffering

    budget = 20 * 1024 * 1024                   # comfortably under scoped VMEM
    max_bt = max(1, min(B, budget // max(per_head, 1), 4096))
    bt = 1
    for cand in range(int(max_bt), 0, -1):      # largest divisor of B <= max_bt
        if B % cand == 0:
            bt = cand
            break
    return bt, tq


def scaled_dot_product_attention(q, k, v, mask=None, *, d_k=None,
                                 return_attn=True):
    """Pallas equivalent of _ScaledDotProductAttention.forward."""
    B, S_q, dk = q.shape
    _, _, S_k = k.shape
    _, _, d_v = v.shape
    if d_k is None:
        d_k = dk
    scale = 1.0 / math.sqrt(d_k)

    have_mask = mask is not None
    have_attn = bool(return_attn)
    itemsize = jnp.dtype(q.dtype).itemsize
    bt, tq = _choose_tiles(B, S_q, S_k, dk, d_v, itemsize, have_mask, have_attn)
    grid = (B // bt, S_q // tq)

    in_specs = [
        pl.BlockSpec((bt, tq, dk), lambda b, i: (b, i, 0)),
        pl.BlockSpec((bt, dk, S_k), lambda b, i: (b, 0, 0)),
        pl.BlockSpec((bt, S_k, d_v), lambda b, i: (b, 0, 0)),
    ]
    inputs = [q, k, v]
    if have_mask:
        in_specs.append(pl.BlockSpec((bt, tq, S_k), lambda b, i: (b, i, 0)))
        inputs.append(mask.astype(jnp.int8))    # 4x fewer mask bytes than int32

    ctx_spec = pl.BlockSpec((bt, tq, d_v), lambda b, i: (b, i, 0))
    ctx_shape = jax.ShapeDtypeStruct((B, S_q, d_v), q.dtype)
    if have_attn:
        out_specs = [ctx_spec, pl.BlockSpec((bt, tq, S_k), lambda b, i: (b, i, 0))]
        out_shape = (ctx_shape, jax.ShapeDtypeStruct((B, S_q, S_k), q.dtype))
    else:
        out_specs = ctx_spec
        out_shape = ctx_shape

    kernel = functools.partial(_sdpa_kernel, scale=scale,
                               have_mask=have_mask, have_attn=have_attn)

    grid_spec = pltpu.PrefetchScalarGridSpec(
        num_scalar_prefetch=0,
        grid=grid,
        in_specs=in_specs,
        out_specs=out_specs,
    )

    result = pl.pallas_call(
        kernel,
        grid_spec=grid_spec,
        out_shape=out_shape,
        compiler_params=pltpu.CompilerParams(
            dimension_semantics=("parallel", "parallel"),
            vmem_limit_bytes=48 * 1024 * 1024,
        ),
    )(*inputs)

    if have_attn:
        return result[0], result[1]
    return result


def _reference(q, k, v, mask, d_k):
    scores = jnp.einsum("bqd,bdk->bqk", q, k) / math.sqrt(d_k)
    if mask is not None:
        scores = jnp.where(mask, -1.0e9, scores)
    attn = jax.nn.softmax(scores, axis=-1)
    ctx = jnp.einsum("bqk,bkd->bqd", attn, v)
    return ctx, attn


if __name__ == "__main__":
    key = jax.random.PRNGKey(0)
    # B = bs * n_heads = 2 * 2, seq len 8, d_k = d_v = 32 (TST encoder shape)
    B, S, d_k, d_v = 4, 8, 32, 32
    kq, kk, kv, km = jax.random.split(key, 4)
    q = jax.random.normal(kq, (B, S, d_k), dtype=jnp.float32)
    k = jax.random.normal(kk, (B, d_k, S), dtype=jnp.float32)
    v = jax.random.normal(kv, (B, S, d_v), dtype=jnp.float32)
    mask = jax.random.bernoulli(km, p=0.25, shape=(B, S, S))

    # f32, no mask (no mask tensor is materialized / DMA'd)
    ctx0, attn0 = scaled_dot_product_attention(q, k, v, mask=None, d_k=d_k)
    # f32, masked
    ctx1, attn1 = scaled_dot_product_attention(q, k, v, mask=mask, d_k=d_k)
    # f32, masked, context-only (drops the attn HBM writeback)
    ctx2 = scaled_dot_product_attention(q, k, v, mask=mask, d_k=d_k,
                                        return_attn=False)
    # bf16 path: native bf16 operands straight to the MXU
    qb, kb, vb = (x.astype(jnp.bfloat16) for x in (q, k, v))
    ctx3, attn3 = scaled_dot_product_attention(qb, kb, vb, mask=mask, d_k=d_k)
    jax.block_until_ready((ctx0, attn0, ctx1, attn1, ctx2, ctx3, attn3))

    ref_ctx0, ref_attn0 = _reference(q, k, v, None, d_k)
    ref_ctx1, ref_attn1 = _reference(q, k, v, mask, d_k)
    refb_ctx, refb_attn = _reference(qb.astype(jnp.float32),
                                     kb.astype(jnp.float32),
                                     vb.astype(jnp.float32), mask, d_k)

    assert jnp.allclose(ctx0, ref_ctx0, atol=1e-5, rtol=1e-5)
    assert jnp.allclose(attn0, ref_attn0, atol=1e-5, rtol=1e-5)
    assert jnp.allclose(ctx1, ref_ctx1, atol=1e-5, rtol=1e-5)
    assert jnp.allclose(attn1, ref_attn1, atol=1e-5, rtol=1e-5)
    assert jnp.allclose(ctx2, ref_ctx1, atol=1e-5, rtol=1e-5)
    assert jnp.allclose(ctx3.astype(jnp.float32), refb_ctx, atol=2e-2, rtol=2e-2)
    assert jnp.allclose(attn3.astype(jnp.float32), refb_attn, atol=2e-2, rtol=2e-2)

    print("KERNEL_OK")
</pallas_src>

<mosaic_0001>
module attributes {stable_mosaic.version = 11 : i64} {
  func.func @_sdpa_kernel(%arg0: i32, %arg1: i32, %arg2: memref<4x8x32xf32, #tpu.memory_space<vmem>>, %arg3: memref<4x32x8xf32, #tpu.memory_space<vmem>>, %arg4: memref<4x8x32xf32, #tpu.memory_space<vmem>>, %arg5: memref<4x8x32xf32, #tpu.memory_space<vmem>>, %arg6: memref<4x8x8xf32, #tpu.memory_space<vmem>>) attributes {dimension_semantics = [#tpu.dimension_semantics<parallel>, #tpu.dimension_semantics<parallel>], iteration_bounds = array<i64: 1, 1>, scalar_prefetch = 0 : i64, scratch_operands = 0 : i64, tpu.core_type = #tpu.core_type<tc>, window_params = [{transform_indices = @transform_0, window_bounds = array<i64: 4, 8, 32>}, {transform_indices = @transform_1, window_bounds = array<i64: 4, 32, 8>}, {transform_indices = @transform_2, window_bounds = array<i64: 4, 8, 32>}, {transform_indices = @transform_3, window_bounds = array<i64: 4, 8, 32>}, {transform_indices = @transform_4, window_bounds = array<i64: 4, 8, 8>}]} {
    %c0 = arith.constant 0 : index
    %c0_0 = arith.constant 0 : index
    %c0_1 = arith.constant 0 : index
    %0 = vector.load %arg2[%c0, %c0_0, %c0_1] : memref<4x8x32xf32, #tpu.memory_space<vmem>>, vector<4x8x32xf32>
    %cst = arith.constant 0.176776692 : f32
    %1 = vector.broadcast %cst : f32 to vector<4x8x32xf32>
    %2 = arith.mulf %0, %1 : vector<4x8x32xf32>
    %c0_2 = arith.constant 0 : index
    %c0_3 = arith.constant 0 : index
    %c0_4 = arith.constant 0 : index
    %3 = vector.load %arg3[%c0_2, %c0_3, %c0_4] : memref<4x32x8xf32, #tpu.memory_space<vmem>>, vector<4x32x8xf32>
    "tpu.trace_start"() <{level = 10 : i32, message = "bqd,bdk->bqk"}> : () -> ()
    %cst_5 = arith.constant dense<0.000000e+00> : vector<4x8x8xf32>
    %4 = tpu.matmul %2, %3, %cst_5 {dimension_numbers = #tpu.dot_dimension_numbers<[2], [1], [1], [2], [0, 0, 0, 1, 1, 2], [0], [0]>} : vector<4x8x32xf32>, vector<4x32x8xf32>, vector<4x8x8xf32> -> vector<4x8x8xf32>
    "tpu.trace_stop"() : () -> ()
    %cst_6 = arith.constant dense<0xFF800000> : vector<4x8xf32>
    %5 = vector.multi_reduction <maximumf>, %4, %cst_6 [2] : vector<4x8x8xf32> to vector<4x8xf32>
    %6 = vector.shape_cast %5 : vector<4x8xf32> to vector<4x8x1xf32>
    %7 = vector.broadcast %6 : vector<4x8x1xf32> to vector<4x8x8xf32>
    %8 = arith.subf %4, %7 : vector<4x8x8xf32>
    %9 = math.exp %8 : vector<4x8x8xf32>
    %cst_7 = arith.constant dense<0.000000e+00> : vector<4x8xf32>
    %10 = vector.multi_reduction <add>, %9, %cst_7 [2] : vector<4x8x8xf32> to vector<4x8xf32>
    %11 = vector.shape_cast %10 : vector<4x8xf32> to vector<4x8x1xf32>
    %12 = vector.broadcast %11 : vector<4x8x1xf32> to vector<4x8x8xf32>
    %13 = arith.divf %9, %12 : vector<4x8x8xf32>
    %c0_8 = arith.constant 0 : index
    %c0_9 = arith.constant 0 : index
    %c0_10 = arith.constant 0 : index
    %14 = vector.load %arg4[%c0_8, %c0_9, %c0_10] : memref<4x8x32xf32, #tpu.memory_space<vmem>>, vector<4x8x32xf32>
    "tpu.trace_start"() <{level = 10 : i32, message = "bqk,bkd->bqd"}> : () -> ()
    %cst_11 = arith.constant dense<0.000000e+00> : vector<4x8x32xf32>
    %15 = tpu.matmul %13, %14, %cst_11 {dimension_numbers = #tpu.dot_dimension_numbers<[2], [1], [1], [2], [0, 0, 0, 1, 1, 2], [0], [0]>} : vector<4x8x8xf32>, vector<4x8x32xf32>, vector<4x8x32xf32> -> vector<4x8x32xf32>
    "tpu.trace_stop"() : () -> ()
    %c0_12 = arith.constant 0 : index
    %c0_13 = arith.constant 0 : index
    %c0_14 = arith.constant 0 : index
    %16 = vector.load %arg5[%c0_12, %c0_13, %c0_14] : memref<4x8x32xf32, #tpu.memory_space<vmem>>, vector<4x8x32xf32>
    tpu.vector_store %arg5[%c0_12, %c0_13, %c0_14], %15 {strides = array<i32>} : memref<4x8x32xf32, #tpu.memory_space<vmem>>, vector<4x8x32xf32>,
    %c0_15 = arith.constant 0 : index
    %c0_16 = arith.constant 0 : index
    %c0_17 = arith.constant 0 : index
    %17 = vector.load %arg6[%c0_15, %c0_16, %c0_17] : memref<4x8x8xf32, #tpu.memory_space<vmem>>, vector<4x8x8xf32>
    tpu.vector_store %arg6[%c0_15, %c0_16, %c0_17], %13 {strides = array<i32>} : memref<4x8x8xf32, #tpu.memory_space<vmem>>, vector<4x8x8xf32>,
    return
  }
  func.func @transform_0(%arg0: i32, %arg1: i32) -> (i32, i32, i32) {
    %c0_i32 = arith.constant 0 : i32
    %c0_i32_0 = arith.constant 0 : i32
    return %arg0, %arg1, %c0_i32 : i32, i32, i32
  }
  func.func @transform_1(%arg0: i32, %arg1: i32) -> (i32, i32, i32) {
    %c0_i32 = arith.constant 0 : i32
    %c0_i32_0 = arith.constant 0 : i32
    %c0_i32_1 = arith.constant 0 : i32
    return %arg0, %c0_i32, %c0_i32_0 : i32, i32, i32
  }
  func.func @transform_2(%arg0: i32, %arg1: i32) -> (i32, i32, i32) {
    %c0_i32 = arith.constant 0 : i32
    %c0_i32_0 = arith.constant 0 : i32
    %c0_i32_1 = arith.constant 0 : i32
    return %arg0, %c0_i32, %c0_i32_0 : i32, i32, i32
  }
  func.func @transform_3(%arg0: i32, %arg1: i32) -> (i32, i32, i32) {
    %c0_i32 = arith.constant 0 : i32
    %c0_i32_0 = arith.constant 0 : i32
    return %arg0, %arg1, %c0_i32 : i32, i32, i32
  }
  func.func @transform_4(%arg0: i32, %arg1: i32) -> (i32, i32, i32) {
    %c0_i32 = arith.constant 0 : i32
    %c0_i32_0 = arith.constant 0 : i32
    return %arg0, %arg1, %c0_i32 : i32, i32, i32
  }
}

</mosaic_0001>

<bundles_post_ra>
// kernel: tpu_custom_call.1
= control target key start
LH: loop header
LB: loop body
LE: loop exit
PB: predicated region body
PF: predicated region fallthrough
CT: control target
= control target key end

     0   :  { %10 = vsyncpa [#allocation3], 0  ;;  %v911_v3 = vmov 0.0|0.0   ;;  %vm912_vm0 = vmmov 0   ;;  %v913_v9 = vmov 0.0   ;;  %s1089_s0 = inlined_call_operand.vmem [shape: f32[4,8,32], index: 0, kind: input, shape index: {}]   ;;  %s1090_s1 = inlined_call_operand.vmem [shape: f32[4,32,8], index: 1, kind: input, shape index: {}]   ;;  %s1091_s2 = inlined_call_operand.vmem [shape: f32[4,8,32], index: 2, kind: input, shape index: {}]   ;;  %s1092_s3 = inlined_call_operand.hbm [shape: f32[4,8,32], index: 3, kind: output, shape index: {0}]   ;;  %s1093_s4 = inlined_call_operand.hbm [shape: f32[4,8,8], index: 4, kind: output, shape index: {1}]  }
   0x1   :  { %v26_v0 = vld [vmem:[%s1090_s1] sm:$0xff]  ;;  %v27_v1 = vld [vmem:[%s1090_s1 + $0x8] sm:$0xff]  ;;  %816 = vmatprep.subr.bf16.mxu0 %v911_v3  ;;  %822 = vmatprep.subr.bf16.mxu1 %v911_v3  ;;  %v28_v6 = vld [vmem:[%s1090_s1 + $0x10] sm:$0xff] }
   0x2   :  { %v30_v2 = vld [vmem:[%s1090_s1 + $0x20] sm:$0xff]  ;;  %v817_v4 = vpack.c.bf16 %v27_v1, %v26_v0  ;;  %v31_v5 = vld [vmem:[%s1090_s1 + $0x28] sm:$0xff]  ;;  %v29_v7 = vld [vmem:[%s1090_s1 + $0x18] sm:$0xff]  ;;  %760 = vmatprep.mubr.msk.f32.mxu0 %vm912_vm0, %v913_v9  ;;  %771 = vmatprep.mubr.msk.f32.mxu1 %vm912_vm0, %v913_v9 }
   0x3   :  { %v823_v8 = vpack.c.bf16 %v31_v5, %v30_v2  ;;  %v32_v10 = vld [vmem:[%s1090_s1 + $0x30] sm:$0xff]  ;;  %v33_v11 = vld [vmem:[%s1090_s1 + $0x38] sm:$0xff]  ;;  %v820_v12 = vpack.c.bf16 %v29_v7, %v28_v6  ;;  %v18_v13 = vld [vmem:[%s1089_s0] sm:$0xff] }
   0x4   :  { %818 = vmatpush3.bf16.msra.mxu0 %v817_v4  ;;  %v826_v14 = vpack.c.bf16 %v33_v11, %v32_v10  ;;  %v34_v15 = vld [vmem:[%s1090_s1 + $0x40] sm:$0xff]  ;;  %v35_v16 = vld [vmem:[%s1090_s1 + $0x48] sm:$0xff]  ;;  %v22_v20 = vmul.f32 0.17677669, %v18_v13 }
   0x5   :  { %819 = vmatprep.subr.bf16.mxu0 %v911_v3  ;;  %824 = vmatpush3.bf16.msra.mxu1 %v823_v8  ;;  %v19_v17 = vld [vmem:[%s1089_s0 + $0x8] sm:$0xff]  ;;  %v38_v18 = vld [vmem:[%s1090_s1 + $0x60] sm:$0xff] }
   0x6   :  { %825 = vmatprep.subr.bf16.mxu1 %v911_v3  ;;  %v39_v19 = vld [vmem:[%s1090_s1 + $0x68] sm:$0xff] }
   0x7   :  { %11 = vsyncpa [#allocation5], 0  ;;  %vm42_vm1 = vcmask 261120   ;;  %v829_v21 = vpack.c.bf16 %v35_v16, %v34_v15  ;;  %v23_v22 = vmul.f32 0.17677669, %v19_v17  ;;  %v835_v23 = vpack.c.bf16 %v39_v19, %v38_v18  ;;  %v36_v24 = vld [vmem:[%s1090_s1 + $0x50] sm:$0xff] }
   0x8   :  { %821 = vmatpush3.bf16.msra.mxu0 %v820_v12  ;;  %v37_v25 = vld [vmem:[%s1090_s1 + $0x58] sm:$0xff]  ;;  %v40_v26 = vld [vmem:[%s1090_s1 + $0x70] sm:$0xff]  ;;  %vm335_vm2 = vcmask 64512   ;;  %v380_v2 = vld [vmem:[%s1091_s2] sm:$0xff] }
   0x9   :  { %827 = vmatpush3.bf16.msra.mxu1 %v826_v14  ;;  %828 = vmatprep.subr.bf16.mxu0 %v911_v3  ;;  %v41_v27 = vld [vmem:[%s1090_s1 + $0x78] sm:$0xff]  ;;  %v832_v28 = vpack.c.bf16 %v37_v25, %v36_v24  ;;  %v20_v29 = vld [vmem:[%s1089_s0 + $0x10] sm:$0xff] }
   0xa   :  { %834 = vmatprep.subr.bf16.mxu1 %v911_v3  ;;  %v838_v30 = vpack.c.bf16 %v41_v27, %v40_v26  ;;  %v21_v31 = vld [vmem:[%s1089_s0 + $0x18] sm:$0xff]  ;;  %v24_v32 = vmul.f32 0.17677669, %v20_v29  ;;  %v382_v11 = vld [vmem:[%s1091_s2 + $0x10] sm:$0xff] }
   0xb   :  { %761 = vmatmul.mubr.msk.f32.vlgmr.msra.gmra.mrb[0].mxu0 %vm42_vm1, %v22_v20  ;;  %v25_v33 = vmul.f32 0.17677669, %v21_v31  ;;  %v383_v14 = vld [vmem:[%s1091_s2 + $0x18] sm:$0xff] }
   0xc   :  { %830 = vmatpush3.bf16.msra.mxu0 %v829_v21  ;;  %772 = vmatmul.mubr.msk.f32.vlgmr.msra.gmra.mrb[0].mxu1 %vm42_vm1, %v23_v22 }
   0xd   :  { %831 = vmatprep.subr.bf16.mxu0 %v911_v3  ;;  %836 = vmatpush3.bf16.msra.mxu1 %v835_v23 }
   0xe   :  { %782 = vmatprep.mubr.msk.f32.mxu0 %vm912_vm0, %v913_v9  ;;  %837 = vmatprep.subr.bf16.mxu1 %v911_v3  ;;  %v381_v3 = vld [vmem:[%s1091_s2 + $0x8] sm:$0xff]  ;;  %s914_s2 = smov [#allocation4]  }
   0xf   :  { %793 = vmatprep.mubr.msk.f32.mxu1 %vm912_vm0, %v913_v9  ;;  %s701_s9 = sshll.u32 %s914_s2, 4  ;;  %s702_s9 = int_to_ptr.vmem [resolvable:$true] %s701_s9 }
  0x10   :  { %833 = vmatpush3.bf16.msra.mxu0 %v832_v28  ;;  %s863_s10 = scalar_lea.vmem %s702_s9, 512  ;;  %p868_p1 = scmp.lt.s32.totalorder %s702_s9, %s702_s9 }
  0x11   :  { %839 = vmatpush3.bf16.msra.mxu1 %v838_v30  ;;  %796 = vmatprep.subr.mxu0 %v913_v9  ;;  %p864_p0 = scmp.ne.s32.totalorder %s702_s9, %s863_s10  ;;  %p869_p2 = scmp.lt.s32.totalorder %s863_s10, %s863_s10 }
  0x12   :  { %801 = vmatprep.subr.mxu1 %v913_v9 }
  0x13   :  { %783 = vmatmul.mubr.msk.f32.vlgmr.msra.gmra.mrb[2].mxu0 %vm42_vm1, %v24_v32  ;;  %p870_p3 = por %p869_p2, %p868_p1 }
  0x14   :  { %794 = vmatmul.mubr.msk.f32.vlgmr.msra.gmra.mrb[2].mxu1 %vm42_vm1, %v25_v33  ;;  %798 = vmatprep.mubr.msk.f32.mxu0 %vm912_vm0, %v913_v9 }
  0x15   :  { %803 = vmatprep.mubr.msk.f32.mxu1 %vm912_vm0, %v913_v9  ;;  %797 = vmatpush3.msra.mxu0 %v380_v2  ;;  %p871_p4 = pnand %p870_p3, %p864_p0 }
  0x16   :  { %806 = vmatprep.subr.mxu0 %v913_v9  ;;  %802 = vmatpush3.msra.mxu1 %v381_v3 }
  0x17   :  { %811 = vmatprep.subr.mxu1 %v913_v9 }
  0xde   :  { %v112_v34 = vpop.f32.mrb[0].mxu0 }
  0xdf   :  { %v762_v35 = vpop.f32.mrb[1].mxu0  ;;  %v336_v36 = vsel %vm335_vm2, %v112_v34, -inf  ;;  %v185_v37 = vpop.f32.mrb[0].mxu1 }
  0xe0   :  { %337 = vmax.xlane.f32.xlu0 %v336_v36  ;;  %v773_v38 = vpop.f32.mrb[1].mxu1  ;;  %v339_v39 = vsel %vm335_vm2, %v185_v37, -inf }
  0xe4   :  { %340 = vmax.xlane.f32.xlu0 %v339_v39 }
  0xe6   :  { %v258_v40 = vpop.f32.mrb[2].mxu0 }
  0xe7   :  { %v784_v41 = vpop.f32.mrb[3].mxu0  ;;  %v342_v42 = vsel %vm335_vm2, %v258_v40, -inf  ;;  %v331_v43 = vpop.f32.mrb[2].mxu1 }
  0xe8   :  { %343 = vmax.xlane.f32.xlu1 %v342_v42  ;;  %v795_v44 = vpop.f32.mrb[3].mxu1  ;;  %v345_v45 = vsel %vm335_vm2, %v331_v43, -inf }
  0xec   :  { %346 = vmax.xlane.f32.xlu1 %v345_v45 }
 0x16d   :  { %v338_v46 = vpop.xlane.xlu0 %337 }
 0x16e   :  { %v348_v47 = vsub.f32 %v112_v34, %v338_v46 }
 0x170   :  { %v352_v48 = vmul.f32 1.442695, %v348_v47 }
 0x171   :  { %v341_v49 = vpop.xlane.xlu0 %340 }
 0x172   :  { %847 = vpow2.f32 %v352_v48  ;;  %v349_v50 = vsub.f32 %v185_v37, %v341_v49 }
 0x174   :  { %v354_v51 = vmul.f32 1.442695, %v349_v50 }
 0x175   :  { %v344_v52 = vpop.xlane.xlu1 %343 }
 0x176   :  { %849 = vpow2.f32 %v354_v51  ;;  %v350_v53 = vsub.f32 %v258_v40, %v344_v52 }
 0x178   :  { %v356_v54 = vmul.f32 1.442695, %v350_v53 }
 0x179   :  { %v347_v55 = vpop.xlane.xlu1 %346 }
 0x17a   :  { %851 = vpow2.f32 %v356_v54  ;;  %v351_v56 = vsub.f32 %v331_v43, %v347_v55 }
 0x17c   :  { %v848_v57 = vpop.eup %847  ;;  %v358_v58 = vmul.f32 1.442695, %v351_v56 }
 0x17d   :  { %v360_v59 = vsel %vm335_vm2, %v848_v57, 0.0 }
 0x17e   :  { %853 = vpow2.f32 %v358_v58  ;;  %361 = vadd.xlane.f32.xlu0 %v360_v59 }
 0x180   :  { %v850_v60 = vpop.eup %849 }
 0x181   :  { %v363_v61 = vsel %vm335_vm2, %v850_v60, 0.0 }
 0x182   :  { %364 = vadd.xlane.f32.xlu1 %v363_v61 }
 0x184   :  { %v852_v62 = vpop.eup %851 }
 0x185   :  { %v366_v63 = vsel %vm335_vm2, %v852_v62, 0.0 }
 0x186   :  { %367 = vadd.xlane.f32.xlu0 %v366_v63 }
 0x188   :  { %v854_v0 = vpop.eup %853 }
 0x189   :  { %v369_v1 = vsel %vm335_vm2, %v854_v0, 0.0 }
 0x18a   :  { %370 = vadd.xlane.f32.xlu1 %v369_v1 }
 0x20b   :  { %v362_v4 = vpop.xlane.xlu0 %361 }
 0x20c   :  { %855 = vrcp.f32 %v362_v4 }
 0x20f   :  { %v365_v5 = vpop.xlane.xlu1 %364 }
 0x210   :  { %857 = vrcp.f32 %v365_v5 }
 0x213   :  { %v368_v6 = vpop.xlane.xlu0 %367 }
 0x214   :  { %859 = vrcp.f32 %v368_v6 }
 0x216   :  { %v856_v7 = vpop.eup %855 }
 0x217   :  { %v373_v8 = vmul.f32 %v856_v7, %v848_v57  ;;  %v371_v10 = vpop.xlane.xlu1 %370 }
 0x218   :  { %861 = vrcp.f32 %v371_v10 }
 0x219   :  { %680 = vst.msk [vmem:[#allocation4] sm:$0xff] %vm335_vm2, %v373_v8  ;;  %799 = vmatmul.mubr.msk.f32.vlgmr.msra.gmra.mrb[4].mxu0 %vm335_vm2, %v373_v8 }
 0x21a   :  { %v858_v12 = vpop.eup %857  ;;  %807 = vmatpush3.msra.mxu0 %v382_v11  ;;  %808 = vmatprep.mubr.msk.f32.mxu0 %vm912_vm0, %v913_v9 }
 0x21b   :  { %v375_v13 = vmul.f32 %v858_v12, %v850_v60 }
 0x21d   :  { %681 = vst.msk [vmem:[#allocation4 + $0x8] sm:$0xff] %vm335_vm2, %v375_v13  ;;  %804 = vmatmul.mubr.msk.f32.vlgmr.msra.gmra.mrb[4].mxu1 %vm335_vm2, %v375_v13 }
 0x21e   :  { %v860_v15 = vpop.eup %859  ;;  %812 = vmatpush3.msra.mxu1 %v383_v14  ;;  %813 = vmatprep.mubr.msk.f32.mxu1 %vm912_vm0, %v913_v9 }
 0x21f   :  { %v377_v16 = vmul.f32 %v860_v15, %v852_v62 }
 0x221   :  { %682 = vst.msk [vmem:[#allocation4 + $0x10] sm:$0xff] %vm335_vm2, %v377_v16  ;;  %809 = vmatmul.mubr.msk.f32.vlgmr.msra.gmra.mrb[6].mxu0 %vm335_vm2, %v377_v16 }
 0x222   :  { %v862_v17 = vpop.eup %861 }
 0x223   :  { %v379_v18 = vmul.f32 %v862_v17, %v854_v0 }
 0x225   :  { %683 = vst.msk [vmem:[#allocation4 + $0x18] sm:$0xff] %vm335_vm2, %v379_v18  ;;  %814 = vmatmul.mubr.msk.f32.vlgmr.msra.gmra.mrb[6].mxu1 %vm335_vm2, %v379_v18 }
 0x226   :  { %874 = shalt.err (!%p871_p4)
}
 0x227   :  { %s875_s13 = scalar_lea.hbm %s1093_s4, 512 }
 0x228   :  { %p876_p5 = scmp.ne.s32.totalorder %s1093_s4, %s875_s13  ;;  %p879_p6 = scmp.lt.u32.totalorder %s875_s13, %s1093_s4 }
 0x22a   :  { %p881_p7 = pnand %p879_p6, %p876_p5 }
 0x22c   :  { %884 = shalt.err (!%p881_p7)
}
 0x22d   :  { %s915_s18 = smov 128   ;;  %s916_s19 = smov 8  }
 0x22e   :  { %707 = dma.vmem_to_hbm [thread:$0]  %s702_s9, 512, %s1093_s4, [#allocation5], %s915_s18, %s915_s18, %s916_s19  }
 0x22f   :  { %s917_s22 = smov [#allocation2]  }
 0x230   :  { %s689_s23 = sshll.u32 %s917_s22, 4  ;;  %s690_s23 = int_to_ptr.vmem [resolvable:$true] %s689_s23 }
 0x231   :  { %s885_s4 = scalar_lea.vmem %s690_s23, 512  ;;  %p890_p9 = scmp.lt.s32.totalorder %s690_s23, %s690_s23 }
 0x232   :  { %p886_p8 = scmp.ne.s32.totalorder %s690_s23, %s885_s4  ;;  %p891_p10 = scmp.lt.s32.totalorder %s885_s4, %s885_s4 }
 0x234   :  { %p892_p11 = por %p891_p10, %p890_p9 }
 0x236   :  { %p893_p12 = pnand %p892_p11, %p886_p8 }
 0x2ec   :  { %v453_v9 = vpop.f32.mrb[4].mxu0 }
 0x2ed   :  { %676 = vst.msk [vmem:[#allocation2] sm:$0xff] %vm42_vm1, %v453_v9  ;;  %v800_v19 = vpop.f32.mrb[5].mxu0 }
 0x2f0   :  { %v526_v20 = vpop.f32.mrb[4].mxu1 }
 0x2f1   :  { %677 = vst.msk [vmem:[#allocation2 + $0x8] sm:$0xff] %vm42_vm1, %v526_v20  ;;  %v805_v21 = vpop.f32.mrb[5].mxu1 }
 0x2f4   :  { %v599_v22 = vpop.f32.mrb[6].mxu0 }
 0x2f5   :  { %678 = vst.msk [vmem:[#allocation2 + $0x10] sm:$0xff] %vm42_vm1, %v599_v22  ;;  %v810_v23 = vpop.f32.mrb[7].mxu0 }
 0x2f8   :  { %v672_v24 = vpop.f32.mrb[6].mxu1 }
 0x2f9   :  { %679 = vst.msk [vmem:[#allocation2 + $0x18] sm:$0xff] %vm42_vm1, %v672_v24  ;;  %v815_v25 = vpop.f32.mrb[7].mxu1 }
 0x2fa   :  { %896 = shalt.err (!%p893_p12)
}
 0x2fb   :  { %s897_s26 = scalar_lea.hbm %s1092_s3, 512 }
 0x2fc   :  { %p898_p13 = scmp.ne.s32.totalorder %s1092_s3, %s897_s26  ;;  %p901_p0 = scmp.lt.u32.totalorder %s897_s26, %s1092_s3 }
 0x2fe   :  { %p903_p1 = pnand %p901_p0, %p898_p13 }
 0x300   :  { %906 = shalt.err (!%p903_p1)
}
 0x301   :  { %695 = dma.vmem_to_hbm [thread:$0]  %s690_s23, 512, %s1092_s3, [#allocation3], %s915_s18, %s915_s18, %s916_s19  }
 0x302   :  { %907 = dma.done.wait [#allocation3], 512  }
 0x303   :  { %908 = vsyncadd [#allocation3], 4294966784 }
 0x304   :  { %909 = dma.done.wait [#allocation5], 512  }
 0x305   :  { %910 = vsyncadd [#allocation5], 4294966784 }
 0x306   :  { %714 = vsyncpa [#allocation3], 1 }
 0x307   :  { %715 = vsyncpa [#allocation5], 1 }

</bundles_post_ra>
